<compile_context>
chip_gen: v5e
topology: v5e:2x2
jax: 0.10.0
libtpu: 0.0.40
codegen_flags: <defaults>
</compile_context>

<pallas_src>
import functools

import jax
import jax.numpy as jnp
from jax.experimental import pallas as pl
from jax.experimental.pallas import tpu as pltpu


def _mchad_partial_kernel(dist_ref, y_ref, out_ref, *,
                          radius, margin, compute_reg, batch, block_b):
    """Emit per-tile partial sums [center, nll, reg, n_known] into out_ref."""
    i = pl.program_id(0)

    d = dist_ref[...].astype(jnp.float32)          # (TB, C) distances
    y = y_ref[...]                                 # (TB, 1) int32 labels
    tb, n_classes = d.shape

    known_raw = y >= 0                             # (TB, 1) in-distribution
    ragged = (batch % block_b) != 0                # trace-time gate
    if ragged:
        # Last tile extends past the batch; mask out padded (garbage) rows.
        rows = jax.lax.broadcasted_iota(jnp.int32, (tb, 1), 0) + i * block_b
        valid = rows < batch
        known = jnp.logical_and(known_raw, valid)
    else:
        known = known_raw

    # Distance to the target center d[i, y_i] via masked row-sum: no float
    # one-hot materialized, iota only (1, C).
    cls_ids = jax.lax.broadcasted_iota(jnp.int32, (1, n_classes), 1)
    target_d = jnp.sum(jnp.where(y == cls_ids, d, 0.0), axis=1, keepdims=True)

    # ---- L_Lambda: CenterLoss over known samples ----------------------------
    # Row-wise equivalent of clamp(relu(d - r) * onehot, 1e-12, 1e12).sum(1):
    # the (C-1) masked entries each contribute the 1e-12 clamp floor.
    center_row = (jnp.clip(jnp.maximum(target_d - radius, 0.0), 1e-12, 1e12)
                  + (n_classes - 1) * 1e-12)
    center_sum = jnp.sum(jnp.where(known, center_row, 0.0))

    # ---- L_Delta: cross entropy on logits = -d over known samples -----------
    # lse(-d) = -min(d) + log(sum(exp(min(d) - d)));  nll = lse + d[i, y_i]
    row_min = jnp.min(d, axis=1, keepdims=True)                  # (TB, 1)
    lse = jnp.log(jnp.sum(jnp.exp(row_min - d), axis=1, keepdims=True)) - row_min
    nll_sum = jnp.sum(jnp.where(known, lse + target_d, 0.0))

    # ---- L_Theta: CenterRegularizationLoss over unknown samples (sum) -------
    # Trace-time gated: relu(margin^2 - d^2) == 0 identically when margin == 0,
    # and the term is multiplied by weight_oe in the wrapper anyway.
    if compute_reg:
        unknown = jnp.logical_not(known_raw)
        if ragged:
            unknown = jnp.logical_and(unknown, valid)
        reg_row = jnp.sum(jnp.maximum(margin * margin - d * d, 0.0),
                          axis=1, keepdims=True)                 # (TB, 1)
        reg_sum = jnp.sum(jnp.where(unknown, reg_row, 0.0))
    else:
        reg_sum = jnp.float32(0.0)

    n_known = jnp.sum(known.astype(jnp.float32))

    # Write the 4 partial sums into sublanes 0..3 of this tile's output block.
    sub = jax.lax.broadcasted_iota(jnp.int32, (1, 8, 128), 1)
    out_ref[...] = jnp.where(sub == 0, center_sum,
                   jnp.where(sub == 1, nll_sum,
                   jnp.where(sub == 2, reg_sum,
                   jnp.where(sub == 3, n_known, 0.0))))


def _vmem_limit_bytes():
    """Generation-aware scoped-VMEM budget (v7x: 64 MiB physical -> 32 MiB;
    v5e/v6e: 128 MiB physical -> 64 MiB)."""
    try:
        cap = int(pltpu.get_tpu_info().vmem_capacity_bytes)
    except Exception:
        cap = 64 * 1024 * 1024          # conservative (v7x-sized) fallback
    return min(cap // 2, 64 * 1024 * 1024)


def mchad_loss(distmat, y, *, radius=0.0, margin=0.0,
               weight_center=1.0, weight_nll=1.0, weight_oe=1.0, block_b=None):
    """Pallas-backed MCHADLoss.forward(distmat, y)."""
    B, C = distmat.shape
    if not jnp.issubdtype(distmat.dtype, jnp.floating):
        distmat = distmat.astype(jnp.float32)
    # Floating inputs (f32 or bf16) stream at their native width and are cast
    # to f32 inside the kernel (halves HBM read for bf16 distances).
    y2d = jnp.reshape(y, (B, 1)).astype(jnp.int32)

    itemsize = jnp.dtype(distmat.dtype).itemsize
    vmem_limit = _vmem_limit_bytes()
    if block_b is None:
        # Per-row VMEM footprint: 2x double-buffered (TB, C) input tile at its
        # native dtype + ~4 full (TB, C) f32 temporaries + the label column.
        per_row = 2 * C * itemsize + 4 * C * 4 + 16
        tb = int(0.6 * vmem_limit) // per_row
        # Keep each streamed distmat tile in the 2-8 MiB sweet spot (per-step
        # overhead amortized) without growing past the VMEM budget above.
        tb = min(tb, (8 * 1024 * 1024) // max(1, C * itemsize))
    else:
        tb = int(block_b)
    tb = max(16, (tb // 16) * 16)
    if tb >= B:
        tb = B                          # single full-batch tile
    num_tiles = pl.cdiv(B, tb)

    compute_reg = (float(weight_oe) != 0.0) and (float(margin) != 0.0)
    kernel = functools.partial(
        _mchad_partial_kernel,
        radius=float(radius), margin=float(margin), compute_reg=compute_reg,
        batch=B, block_b=tb)

    # Independent per-tile outputs -> "parallel" batch axis (v7x dual-TC).
    parts = pl.pallas_call(
        kernel,
        out_shape=jax.ShapeDtypeStruct((num_tiles, 8, 128), jnp.float32),
        grid_spec=pltpu.PrefetchScalarGridSpec(
            num_scalar_prefetch=0,
            grid=(num_tiles,),
            in_specs=[pl.BlockSpec((tb, C), lambda i: (i, 0)),
                      pl.BlockSpec((tb, 1), lambda i: (i, 0))],
            out_specs=pl.BlockSpec((1, 8, 128), lambda i: (i, 0, 0))),
        compiler_params=pltpu.CompilerParams(
            dimension_semantics=("parallel",),
            vmem_limit_bytes=vmem_limit),
    )(distmat, y2d)

    # Tiny weighted combine in plain JAX.
    center_sum = jnp.sum(parts[:, 0, 0])
    nll_sum = jnp.sum(parts[:, 1, 0])
    reg_sum = jnp.sum(parts[:, 2, 0])
    n_known = jnp.sum(parts[:, 3, 0])
    # Guarded reciprocal reused for both mean-reduced terms; denominator is
    # never zero, so no inf/nan even in the unselected branch.
    inv_n = jnp.where(n_known > 0.0, 1.0 / jnp.maximum(n_known, 1.0), 0.0)
    return ((weight_center * center_sum + weight_nll * nll_sum) * inv_n
            + weight_oe * reg_sum)


class MCHADLoss:
    """Thin JAX wrapper mirroring the PyTorch module's parameters / API."""

    def __init__(self, n_classes, n_dim, radius=0.0, margin=0.0,
                 weight_center=1.0, weight_nll=1.0, weight_oe=1.0, key=None):
        if key is None:
            key = jax.random.PRNGKey(0)
        # Class centers mu_y (n_classes, n_dim); only used by .distance().
        self.centers = jax.random.normal(key, (n_classes, n_dim), jnp.float32)
        self.radius = float(radius)
        self.margin = float(margin)
        self.weight_center = float(weight_center)
        self.weight_nll = float(weight_nll)
        self.weight_oe = float(weight_oe)

    def distance(self, z):
        # Glue (plain JAX): pairwise squared euclidean distances, clamped >= 0.
        x2 = jnp.sum(z * z, axis=1, keepdims=True)                    # (B, 1)
        c2 = jnp.sum(self.centers * self.centers, axis=1)[None, :]    # (1, C)
        d = x2 + c2 - 2.0 * (z @ self.centers.T)
        return jnp.clip(d, 0.0, None)

    def __call__(self, distmat, y):
        return mchad_loss(distmat, y,
                          radius=self.radius, margin=self.margin,
                          weight_center=self.weight_center,
                          weight_nll=self.weight_nll,
                          weight_oe=self.weight_oe)


def mchad_loss_ref(distmat, y, *, radius, margin,
                   weight_center=1.0, weight_nll=1.0, weight_oe=1.0):
    """Pure-JAX reference mirroring the PyTorch forward semantics."""
    d = distmat.astype(jnp.float32)
    B, C = d.shape
    onehot = (y[:, None] == jnp.arange(C)[None, :]).astype(jnp.float32)
    known = (y >= 0).astype(jnp.float32)[:, None]
    unknown = 1.0 - known
    n_known = jnp.sum(known)

    center_terms = jnp.clip(jnp.maximum(d - radius, 0.0) * onehot, 1e-12, 1e12)
    loss_center = jnp.where(n_known > 0,
                            jnp.sum(center_terms * known) / n_known, 0.0)

    logits = -d
    logz = jax.scipy.special.logsumexp(logits, axis=1, keepdims=True)
    nll = logz - jnp.sum(logits * onehot, axis=1, keepdims=True)
    loss_nll = jnp.where(n_known > 0, jnp.sum(nll * known) / n_known, 0.0)

    loss_out = jnp.sum(jnp.maximum(margin * margin - d * d, 0.0) * unknown)
    return (weight_center * loss_center + weight_nll * loss_nll
            + weight_oe * loss_out)


if __name__ == "__main__":
    key = jax.random.PRNGKey(0)
    k_centers, k_z, k_z2 = jax.random.split(key, 3)

    # --- small demo at the module's natural shapes ---------------------------
    B, n_classes, n_dim = 8, 8, 32
    module = MCHADLoss(n_classes=n_classes, n_dim=n_dim,
                       radius=1.0, margin=3.0,
                       weight_center=1.0, weight_nll=1.0, weight_oe=1.0,
                       key=k_centers)

    # labels: mix of known (>= 0) and unknown / OOD (-1) samples
    y = jnp.array([0, 1, 2, -1, 3, -1, 5, 7], dtype=jnp.int32)
    # embeddings near their (clipped) class center so all three terms are live
    z = (module.centers[jnp.clip(y, 0, n_classes - 1)]
         + 0.25 * jax.random.normal(k_z, (B, n_dim), jnp.float32))
    distmat = module.distance(z)                   # (B, C) glue in plain JAX

    loss = jax.block_until_ready(module(distmat, y))
    ref = mchad_loss_ref(distmat, y, radius=module.radius, margin=module.margin,
                         weight_center=module.weight_center,
                         weight_nll=module.weight_nll,
                         weight_oe=module.weight_oe)
    assert jnp.allclose(loss, ref, rtol=1e-4, atol=1e-5), (loss, ref)

    # --- multi-tile path: grid > 1 with a ragged tail (40 rows, TB=16) -------
    B2 = 40
    y2 = (jnp.arange(B2, dtype=jnp.int32) % 10) - 2     # labels in {-2..7}
    z2 = (module.centers[jnp.clip(y2, 0, n_classes - 1)]
          + 0.3 * jax.random.normal(k_z2, (B2, n_dim), jnp.float32))
    d2 = module.distance(z2)
    loss2 = jax.block_until_ready(
        mchad_loss(d2, y2, radius=module.radius, margin=module.margin,
                   weight_center=1.0, weight_nll=1.0, weight_oe=1.0,
                   block_b=16))
    ref2 = mchad_loss_ref(d2, y2, radius=module.radius, margin=module.margin)
    assert jnp.allclose(loss2, ref2, rtol=1e-4, atol=1e-5), (loss2, ref2)

    # --- margin == 0 default: trace-time-gated L_Theta branch ----------------
    loss3 = jax.block_until_ready(
        mchad_loss(d2, y2, radius=module.radius, margin=0.0, block_b=16))
    ref3 = mchad_loss_ref(d2, y2, radius=module.radius, margin=0.0)
    assert jnp.allclose(loss3, ref3, rtol=1e-4, atol=1e-5), (loss3, ref3)

    # --- bf16 distmat streamed at native width, f32 in-kernel compute --------
    d2_bf16 = d2.astype(jnp.bfloat16)
    loss4 = jax.block_until_ready(
        mchad_loss(d2_bf16, y2, radius=module.radius, margin=module.margin,
                   block_b=16))
    ref4 = mchad_loss_ref(d2_bf16, y2, radius=module.radius,
                          margin=module.margin)
    assert jnp.allclose(loss4, ref4, rtol=1e-3, atol=1e-4), (loss4, ref4)

    print("KERNEL_OK")
</pallas_src>

<mosaic_0001>
module attributes {stable_mosaic.version = 11 : i64} {
  func.func @_mchad_partial_kernel(%arg0: i32, %arg1: memref<8x8xf32, #tpu.memory_space<vmem>>, %arg2: memref<8x1xi32, #tpu.memory_space<vmem>>, %arg3: memref<1x8x128xf32, #tpu.memory_space<vmem>>) attributes {dimension_semantics = [#tpu.dimension_semantics<parallel>], iteration_bounds = array<i64: 1>, scalar_prefetch = 0 : i64, scratch_operands = 0 : i64, tpu.core_type = #tpu.core_type<tc>, window_params = [{transform_indices = @transform_0, window_bounds = array<i64: 8, 8>}, {transform_indices = @transform_1, window_bounds = array<i64: 8, 1>}, {transform_indices = @transform_2, window_bounds = array<i64: 1, 8, 128>}]} {
    %c0 = arith.constant 0 : index
    %c0_0 = arith.constant 0 : index
    %0 = vector.load %arg1[%c0, %c0_0] : memref<8x8xf32, #tpu.memory_space<vmem>>, vector<8x8xf32>
    %c0_1 = arith.constant 0 : index
    %c0_2 = arith.constant 0 : index
    %1 = vector.load %arg2[%c0_1, %c0_2] : memref<8x1xi32, #tpu.memory_space<vmem>>, vector<8x1xi32>
    %c0_i32 = arith.constant 0 : i32
    %2 = vector.broadcast %c0_i32 : i32 to vector<8x1xi32>
    %3 = arith.cmpi sge, %1, %2 : vector<8x1xi32>
    %4 = tpu.iota {dimensions = array<i32: 1>} : vector<1x8xi32>
    %5 = vector.broadcast %1 : vector<8x1xi32> to vector<8x8xi32>
    %6 = vector.broadcast %4 : vector<1x8xi32> to vector<8x8xi32>
    %7 = arith.cmpi eq, %5, %6 : vector<8x8xi32>
    %cst = arith.constant 0.000000e+00 : f32
    %8 = vector.broadcast %cst : f32 to vector<8x8xf32>
    %9 = arith.select %7, %0, %8 : vector<8x8xi1>, vector<8x8xf32>
    %cst_3 = arith.constant dense<0.000000e+00> : vector<8xf32>
    %10 = vector.multi_reduction <add>, %9, %cst_3 [1] : vector<8x8xf32> to vector<8xf32>
    %11 = vector.shape_cast %10 : vector<8xf32> to vector<8x1xf32>
    %cst_4 = arith.constant 1.000000e+00 : f32
    %12 = vector.broadcast %cst_4 : f32 to vector<8x1xf32>
    %13 = arith.subf %11, %12 : vector<8x1xf32>
    %cst_5 = arith.constant 0.000000e+00 : f32
    %14 = vector.broadcast %cst_5 : f32 to vector<8x1xf32>
    %15 = arith.maximumf %13, %14 : vector<8x1xf32>
    %cst_6 = arith.constant 9.99999996E-13 : f32
    %cst_7 = arith.constant 9.99999995E+11 : f32
    %16 = vector.broadcast %cst_6 : f32 to vector<8x1xf32>
    %17 = arith.maximumf %16, %15 : vector<8x1xf32>
    %18 = vector.broadcast %cst_7 : f32 to vector<8x1xf32>
    %19 = arith.minimumf %18, %17 : vector<8x1xf32>
    %cst_8 = arith.constant 7.000000e-12 : f32
    %20 = vector.broadcast %cst_8 : f32 to vector<8x1xf32>
    %21 = arith.addf %19, %20 : vector<8x1xf32>
    %cst_9 = arith.constant 0.000000e+00 : f32
    %22 = vector.broadcast %cst_9 : f32 to vector<8x1xf32>
    %23 = arith.select %3, %21, %22 : vector<8x1xi1>, vector<8x1xf32>
    %24 = vector.shape_cast %23 : vector<8x1xf32> to vector<1x8x1xf32>
    %cst_10 = arith.constant dense<0.000000e+00> : vector<1xf32>
    %25 = vector.multi_reduction <add>, %24, %cst_10 [1, 2] : vector<1x8x1xf32> to vector<1xf32>
    %26 = vector.shape_cast %25 : vector<1xf32> to vector<1x1x1xf32>
    %27 = vector.extract %26[0, 0, 0] : f32 from vector<1x1x1xf32>
    %cst_11 = arith.constant dense<0x7F800000> : vector<8xf32>
    %28 = vector.multi_reduction <minimumf>, %0, %cst_11 [1] : vector<8x8xf32> to vector<8xf32>
    %29 = vector.shape_cast %28 : vector<8xf32> to vector<8x1xf32>
    %30 = vector.broadcast %29 : vector<8x1xf32> to vector<8x8xf32>
    %31 = arith.subf %30, %0 : vector<8x8xf32>
    %32 = math.exp %31 : vector<8x8xf32>
    %cst_12 = arith.constant dense<0.000000e+00> : vector<8xf32>
    %33 = vector.multi_reduction <add>, %32, %cst_12 [1] : vector<8x8xf32> to vector<8xf32>
    %34 = vector.shape_cast %33 : vector<8xf32> to vector<8x1xf32>
    %35 = math.log %34 : vector<8x1xf32>
    %36 = arith.subf %35, %29 : vector<8x1xf32>
    %37 = arith.addf %36, %11 : vector<8x1xf32>
    %cst_13 = arith.constant 0.000000e+00 : f32
    %38 = vector.broadcast %cst_13 : f32 to vector<8x1xf32>
    %39 = arith.select %3, %37, %38 : vector<8x1xi1>, vector<8x1xf32>
    %40 = vector.shape_cast %39 : vector<8x1xf32> to vector<1x8x1xf32>
    %cst_14 = arith.constant dense<0.000000e+00> : vector<1xf32>
    %41 = vector.multi_reduction <add>, %40, %cst_14 [1, 2] : vector<1x8x1xf32> to vector<1xf32>
    %42 = vector.shape_cast %41 : vector<1xf32> to vector<1x1x1xf32>
    %43 = vector.extract %42[0, 0, 0] : f32 from vector<1x1x1xf32>
    %cst_15 = arith.constant dense<true> : vector<8x1xi1>
    %44 = arith.xori %3, %cst_15 : vector<8x1xi1>
    %45 = arith.mulf %0, %0 : vector<8x8xf32>
    %cst_16 = arith.constant 9.000000e+00 : f32
    %46 = vector.broadcast %cst_16 : f32 to vector<8x8xf32>
    %47 = arith.subf %46, %45 : vector<8x8xf32>
    %cst_17 = arith.constant 0.000000e+00 : f32
    %48 = vector.broadcast %cst_17 : f32 to vector<8x8xf32>
    %49 = arith.maximumf %47, %48 : vector<8x8xf32>
    %cst_18 = arith.constant dense<0.000000e+00> : vector<8xf32>
    %50 = vector.multi_reduction <add>, %49, %cst_18 [1] : vector<8x8xf32> to vector<8xf32>
    %51 = vector.shape_cast %50 : vector<8xf32> to vector<8x1xf32>
    %cst_19 = arith.constant 0.000000e+00 : f32
    %52 = vector.broadcast %cst_19 : f32 to vector<8x1xf32>
    %53 = arith.select %44, %51, %52 : vector<8x1xi1>, vector<8x1xf32>
    %54 = vector.shape_cast %53 : vector<8x1xf32> to vector<1x8x1xf32>
    %cst_20 = arith.constant dense<0.000000e+00> : vector<1xf32>
    %55 = vector.multi_reduction <add>, %54, %cst_20 [1, 2] : vector<1x8x1xf32> to vector<1xf32>
    %56 = vector.shape_cast %55 : vector<1xf32> to vector<1x1x1xf32>
    %57 = vector.extract %56[0, 0, 0] : f32 from vector<1x1x1xf32>
    %58 = arith.extui %3 : vector<8x1xi1> to vector<8x1xi32>
    %59 = arith.sitofp %58 : vector<8x1xi32> to vector<8x1xf32>
    %60 = vector.shape_cast %59 : vector<8x1xf32> to vector<1x8x1xf32>
    %cst_21 = arith.constant dense<0.000000e+00> : vector<1xf32>
    %61 = vector.multi_reduction <add>, %60, %cst_21 [1, 2] : vector<1x8x1xf32> to vector<1xf32>
    %62 = vector.shape_cast %61 : vector<1xf32> to vector<1x1x1xf32>
    %63 = vector.extract %62[0, 0, 0] : f32 from vector<1x1x1xf32>
    %64 = tpu.iota {dimensions = array<i32: 1>} : vector<1x8x128xi32>
    %c0_i32_22 = arith.constant 0 : i32
    %65 = vector.broadcast %c0_i32_22 : i32 to vector<1x8x128xi32>
    %66 = arith.cmpi eq, %64, %65 : vector<1x8x128xi32>
    %c1_i32 = arith.constant 1 : i32
    %67 = vector.broadcast %c1_i32 : i32 to vector<1x8x128xi32>
    %68 = arith.cmpi eq, %64, %67 : vector<1x8x128xi32>
    %c2_i32 = arith.constant 2 : i32
    %69 = vector.broadcast %c2_i32 : i32 to vector<1x8x128xi32>
    %70 = arith.cmpi eq, %64, %69 : vector<1x8x128xi32>
    %c3_i32 = arith.constant 3 : i32
    %71 = vector.broadcast %c3_i32 : i32 to vector<1x8x128xi32>
    %72 = arith.cmpi eq, %64, %71 : vector<1x8x128xi32>
    %cst_23 = arith.constant 0.000000e+00 : f32
    %73 = vector.broadcast %63 : f32 to vector<1x8x128xf32>
    %74 = vector.broadcast %cst_23 : f32 to vector<1x8x128xf32>
    %75 = arith.select %72, %73, %74 : vector<1x8x128xi1>, vector<1x8x128xf32>
    %76 = vector.broadcast %57 : f32 to vector<1x8x128xf32>
    %77 = arith.select %70, %76, %75 : vector<1x8x128xi1>, vector<1x8x128xf32>
    %78 = vector.broadcast %43 : f32 to vector<1x8x128xf32>
    %79 = arith.select %68, %78, %77 : vector<1x8x128xi1>, vector<1x8x128xf32>
    %80 = vector.broadcast %27 : f32 to vector<1x8x128xf32>
    %81 = arith.select %66, %80, %79 : vector<1x8x128xi1>, vector<1x8x128xf32>
    %c0_24 = arith.constant 0 : index
    %c0_25 = arith.constant 0 : index
    %c0_26 = arith.constant 0 : index
    %82 = vector.load %arg3[%c0_24, %c0_25, %c0_26] : memref<1x8x128xf32, #tpu.memory_space<vmem>>, vector<1x8x128xf32>
    tpu.vector_store %arg3[%c0_24, %c0_25, %c0_26], %81 {strides = array<i32>} : memref<1x8x128xf32, #tpu.memory_space<vmem>>, vector<1x8x128xf32>,
    return
  }
  func.func @transform_0(%arg0: i32) -> (i32, i32) {
    %c0_i32 = arith.constant 0 : i32
    %c0_i32_0 = arith.constant 0 : i32
    return %arg0, %c0_i32 : i32, i32
  }
  func.func @transform_1(%arg0: i32) -> (i32, i32) {
    %c0_i32 = arith.constant 0 : i32
    %c0_i32_0 = arith.constant 0 : i32
    return %arg0, %c0_i32 : i32, i32
  }
  func.func @transform_2(%arg0: i32) -> (i32, i32, i32) {
    %c0_i32 = arith.constant 0 : i32
    %c0_i32_0 = arith.constant 0 : i32
    %c0_i32_1 = arith.constant 0 : i32
    return %arg0, %c0_i32, %c0_i32_0 : i32, i32, i32
  }
}

</mosaic_0001>

<bundles_post_ra>
// kernel: tpu_custom_call.1
= control target key start
LH: loop header
LB: loop body
LE: loop exit
PB: predicated region body
PF: predicated region fallthrough
CT: control target
= control target key end

     0   :  { %vm22_vm0 = vcmask 64512   ;;  %s215_s0 = inlined_call_operand.vmem [shape: f32[8,8], index: 0, kind: input, shape index: {}]   ;;  %s216_s1 = inlined_call_operand.vmem [shape: s32[8,1], index: 1, kind: input, shape index: {}]   ;;  %s217_s2 = inlined_call_operand.hbm [shape: f32[1,8,128], index: 2, kind: output, shape index: {}]  }
   0x1   :  { %v12_v0 = vld [vmem:[%s215_s0] sm:$0xff] }
   0x2   :  { %7 = vsyncpa [#allocation3], 0  ;;  %v43_v1 = vsel %vm22_vm0, %v12_v0, inf  ;;  %v173_v2 = vmov 0   ;;  %v13_v3 = vld [vmem:[%s216_s1] sm:$0xff]  ;;  %v68_v4 = vmul.f32 %v12_v0, %v12_v0  ;;  %v15_v13 = vlaneseq  ;;  %s176_s15 = smov [#allocation2]  }
   0x3   :  { %142 = vset.pattern.permute.xlu0 %v173_v2  ;;  %vm14_vm2 = vcmp.ge.s32.totalorder %v13_v3, 0  ;;  %vm32_vm3 = vcmask 7168   ;;  %v174_v30 = vmov 0.0   ;;  %vm175_vm4 = vmmov 1   ;;  %s117_s16 = sshll.u32 %s176_s15, 4  ;;  %s119_s19 = sshll.u32 %s217_s2, 4  ;;  %s118_s16 = int_to_ptr.vmem [resolvable:$true] %s117_s16  ;;  %s120_s19 = int_to_ptr.hbm [resolvable:$true] %s119_s19 }
   0x4   :  { %44 = vmin.xlane.f32.xlu0 %v43_v1  ;;  %v69_v5 = vsub.f32 9.0, %v68_v4  ;;  %v16_v14 = vand.u32 127, %v15_v13  ;;  %v129_v31 = vsel %vm14_vm2, 1.0, %v174_v30  ;;  %vm67_vm5 = vmxor %vm14_vm2, %vm175_vm4 }
   0x5   :  { %v87_v34 = vsel %vm32_vm3, %v129_v31, 0.0 }
   0x6   :  { %v70_v6 = vmax.f32 %v69_v5, 0.0 }
   0x8   :  { %v71_v7 = vsel %vm22_vm0, %v70_v6, 0.0 }
   0x9   :  { %72 = vadd.xlane.f32.xlu2 %v71_v7 }
  0x18   :  { %18 = vperm.xlu0 %142, %v13_v3   ;;  %v98_v3 = vshrl.u32 %v15_v13, 7 }
  0x1a   :  { %vm102_vm6 = vcmp.eq.s32.totalorder %v98_v3, 3  ;;  %vm101_vm7 = vcmp.eq.s32.totalorder %v98_v3, 2  ;;  %vm100_vm8 = vcmp.eq.s32.totalorder %v98_v3, 1  ;;  %vm99_vm9 = vcmp.eq.s32.totalorder %v98_v3, 0 }
  0x77   :  { %v45_v8 = vpop.xlane.xlu0 %44 }
  0x78   :  { %v46_v9 = vsub.f32 %v45_v8, %v12_v0 }
  0x7a   :  { %v47_v10 = vmul.f32 1.442695, %v46_v9 }
  0x7c   :  { %143 = vpow2.f32 %v47_v10  ;;  %v73_v36 = vpop.xlane.xlu2 %72 }
  0x7d   :  { %v74_v37 = vsel %vm67_vm5, %v73_v36, 0.0 }
  0x7e   :  { %v75_v38 = vsel %vm32_vm3, %v74_v37, 0.0 }
  0x82   :  { %v144_v11 = vpop.eup %143 }
  0x83   :  { %v49_v12 = vsel %vm22_vm0, %v144_v11, 0.0 }
  0x84   :  { %50 = vadd.xlane.f32.xlu1 %v49_v12 }
  0x8a   :  { %v19_v15 = vpop.permute.xlu0 %18 }
  0x8b   :  { %vm20_vm1 = vcmp.eq.s32.totalorder %v19_v15, %v16_v14 }
  0x8c   :  { %v21_v16 = vsel %vm20_vm1, %v12_v0, 0.0 }
  0x8d   :  { %v23_v17 = vsel %vm22_vm0, %v21_v16, 0.0 }
  0x8e   :  { %24 = vadd.xlane.f32.xlu1 %v23_v17 }
  0xf7   :  { %v51_v18 = vpop.xlane.xlu1 %50 }
  0xf8   :  { %145 = vlog2.f32 %v51_v18 }
  0xfe   :  { %v146_v19 = vpop.eup %145 }
  0xff   :  { %v53_v20 = vmul.f32 0.6931472, %v146_v19 }
 0x101   :  { %v54_v21 = vsub.f32 %v53_v20, %v45_v8  ;;  %v25_v22 = vpop.xlane.xlu1 %24 }
 0x102   :  { %v128_v23 = vadd.f32 -1.0, %v25_v22 }
 0x103   :  { %v55_v24 = vadd.f32 %v54_v21, %v25_v22 }
 0x104   :  { %v27_v25 = vmax.f32 %v128_v23, 0.0 }
 0x105   :  { %v56_v26 = vsel %vm14_vm2, %v55_v24, 0.0 }
 0x106   :  { %v28_v27 = vmax.f32 %v27_v25, 1e-12  ;;  %v57_v28 = vsel %vm32_vm3, %v56_v26, 0.0 }
 0x107   :  { %58 = vadd.xlane.f32.xlu1 %v57_v28 }
 0x108   :  { %v29_v29 = vmin.f32 %v28_v27, 1e+12 }
 0x10a   :  { %v30_v32 = vadd.f32 7e-12, %v29_v29 }
 0x10c   :  { %v31_v33 = vsel %vm14_vm2, %v30_v32, 0.0 }
 0x10d   :  { %v33_v35 = vsel %vm32_vm3, %v31_v33, 0.0 }
 0x10e   :  { %34 = vadd.xlane.f32.xlu2 %v33_v35 }
 0x10f   :  { %88 = vadd.xlane.f32.xlu1 %v87_v34 }
 0x116   :  { %76 = vadd.xlane.f32.xlu2 %v75_v38 }
 0x17a   :  { %v59_v39 = vpop.xlane.xlu1 %58 }
 0x17b   :  { %v60_v40 = vrot.slane %v59_v39, 4 }
 0x17d   :  { %v61_v41 = vadd.f32 %v60_v40, %v59_v39 }
 0x17f   :  { %v62_v42 = vrot.slane %v61_v41, 2 }
 0x181   :  { %v35_v43 = vpop.xlane.xlu2 %34  ;;  %v63_v49 = vadd.f32 %v62_v42, %v61_v41 }
 0x182   :  { %v36_v44 = vrot.slane %v35_v43, 4  ;;  %v89_v45 = vpop.xlane.xlu1 %88 }
 0x183   :  { %v90_v46 = vrot.slane %v89_v45, 4  ;;  %v64_v54 = vrot.slane %v63_v49, 1 }
 0x184   :  { %v37_v47 = vadd.f32 %v36_v44, %v35_v43 }
 0x185   :  { %v91_v48 = vadd.f32 %v90_v46, %v89_v45  ;;  %v65_v60 = vadd.f32 %v64_v54, %v63_v49 }
 0x186   :  { %v38_v50 = vrot.slane %v37_v47, 2 }
 0x187   :  { %v92_v52 = vrot.slane %v91_v48, 2 }
 0x188   :  { %v39_v51 = vadd.f32 %v38_v50, %v37_v47 }
 0x189   :  { %v77_v53 = vpop.xlane.xlu2 %76  ;;  %v93_v59 = vadd.f32 %v92_v52, %v91_v48 }
 0x18a   :  { %v78_v55 = vrot.slane %v77_v53, 4  ;;  %v40_v56 = vrot.slane %v39_v51, 1 }
 0x18b   :  { %v94_v63 = vrot.slane %v93_v59, 1 }
 0x18c   :  { %v79_v57 = vadd.f32 %v78_v55, %v77_v53  ;;  %v41_v58 = vadd.f32 %v40_v56, %v39_v51 }
 0x18d   :  { %v95_v2 = vadd.f32 %v94_v63, %v93_v59 }
 0x18e   :  { %v80_v61 = vrot.slane %v79_v57, 2  ;;  %130 = vpush %v41_v58 }
 0x18f   :  { %132 = vpush %v65_v60 }
 0x190   :  { %v81_v62 = vadd.f32 %v80_v61, %v79_v57 }
 0x192   :  { %v82_v0 = vrot.slane %v81_v62, 1 }
 0x194   :  { %v83_v1 = vadd.f32 %v82_v0, %v81_v62 }
 0x196   :  { %134 = vpush %v83_v1 }
 0x197   :  { %136 = vpush %v95_v2 }
 0x1bf   :  { %s131_s0 = spop %130 }
 0x1c0   :  { %s133_s1 = spop %132  ;;  %v109_v9 = vstv %s131_s0 }
 0x1c1   :  { %v107_v7 = vstv %s133_s1 }
 0x1c7   :  { %s135_s13 = spop %134 }
 0x1c8   :  { %v105_v4 = vstv %s135_s13  ;;  %s137_s14 = spop %136 }
 0x1c9   :  { %v103_v5 = vstv %s137_s14 }
 0x1ca   :  { %v104_v6 = vsel %vm102_vm6, %v103_v5, 0.0 }
 0x1cb   :  { %v106_v8 = vsel %vm101_vm7, %v105_v4, %v104_v6 }
 0x1cc   :  { %v108_v10 = vsel %vm100_vm8, %v107_v7, %v106_v8 }
 0x1cd   :  { %v110_v11 = vsel %vm99_vm9, %v109_v9, %v108_v10 }
 0x1ce   :  { %111 = vst [vmem:[#allocation2] sm:$0xff] %v110_v11 }
 0x1cf   :  { %122 = dma.vmem_to_hbm [thread:$0]  %s118_s16, 128, %s120_s19, [#allocation3]  }
 0x1d0   :  { %171 = dma.done.wait [#allocation3], 128  }
 0x1d1   :  { %172 = vsyncadd [#allocation3], 4294967168 }
 0x1d2   :  { %127 = vsyncpa [#allocation3], 1 }

</bundles_post_ra>
